<compile_context>
chip_gen: v7x
topology: tpu7x:2x2x1
jax: 0.10.0
libtpu: 0.0.40
codegen_flags: <defaults>
</compile_context>

<pallas_src>
import functools

import numpy as np
import jax
import jax.numpy as jnp
from jax.experimental import pallas as pl
from jax.experimental.pallas import tpu as pltpu

EPS = 1e-6           # clamp epsilon in the loss (matches the module)
NORM_EPS = 1e-12     # F.normalize default eps
NEG_INF = -1e30      # padding value for masked class logits
SUBLANE = 16         # batch-tile alignment (safe for bf16 sublane packing)


def _round_up(x, m):
    return ((x + m - 1) // m) * m


def _vmem_budget():
    """Generation-aware scoped-VMEM limit + usable budget (bytes)."""
    default_cap = 64 * 1024 * 1024          # conservative (v7x per-TC VMEM)
    try:
        cap = int(getattr(pltpu.get_tpu_info(), "vmem_capacity_bytes",
                          default_cap))
    except Exception:
        cap = default_cap
    limit = min((cap * 3) // 4, 100 * 1024 * 1024)   # v5e/v6e ~96M, v7x ~48M
    budget = (limit * 17) // 20                      # 85% of the scoped limit
    return limit, budget


# ----------------------------------------------------------------------------
# Pallas kernel: one batch tile of the loss math -> lane-dense partial sums.
# ----------------------------------------------------------------------------
def _ncod_loss_kernel(b_true, c_true, mask_rows, mask_cols,
                      emb_ref, cent_ref, logits_ref, u_ref, tgt_ref, out_ref):
    tb = emb_ref.shape[0]
    c_pad = logits_ref.shape[1]

    # (1, C_pad) lane iota broadcast against (TB, 1) operands (no full-tile
    # int32 materialization).
    col_iota = jax.lax.broadcasted_iota(jnp.int32, (1, c_pad), 1)
    valid_col = col_iota < c_true                                    # (1, C_pad)

    # soft_labels = softmax(embeddings @ centroids_n.T) over true classes.
    # bf16 inputs, f32 accumulation (MXU-native path).
    sims = jnp.dot(emb_ref[...], cent_ref[...],
                   preferred_element_type=jnp.float32)               # (TB, C_pad)
    if mask_cols:
        sims = jnp.where(valid_col, sims, NEG_INF)
    s_shift = sims - jnp.max(sims, axis=1, keepdims=True)
    s_exp = jnp.exp(s_shift)
    soft = s_exp * (1.0 / jnp.sum(s_exp, axis=1, keepdims=True))

    # softmax pieces of the model logits (padded entries already NEG_INF).
    logits = logits_ref[...]                                         # (TB, C_pad)
    l_shift = logits - jnp.max(logits, axis=1, keepdims=True)
    l_exp = jnp.exp(l_shift)
    l_sum = jnp.sum(l_exp, axis=1, keepdims=True)
    probs = l_exp * (1.0 / l_sum)
    log_l_sum = jnp.log(l_sum)                                       # (TB, 1)

    u_vals = jax.nn.sigmoid(u_ref[...])                              # (TB, 1)

    # adjusted = clamp(probs + u * soft, eps); zero padded classes; renorm row.
    adj = jnp.maximum(probs + u_vals * soft, EPS)
    if mask_cols:
        adj = jnp.where(valid_col, adj, 0.0)
    adj = adj * (1.0 / jnp.sum(adj, axis=1, keepdims=True))
    if mask_cols:
        log_adj = jnp.log(jnp.where(valid_col, adj, 1.0))
    else:
        log_adj = jnp.log(adj)

    # hard CE without materializing log_probs:
    #   ce = log(sum exp(l_shift)) - l_shift[target]
    tgt_shift = jnp.sum(jnp.where(col_iota == tgt_ref[...], l_shift, 0.0),
                        axis=1, keepdims=True)                       # (TB, 1)
    ce = log_l_sum - tgt_shift

    hard_terms = (1.0 - u_vals) * ce                                 # (TB, 1)
    soft_terms = jnp.sum(-soft * log_adj, axis=1, keepdims=True)     # (TB, 1)
    diff = adj - soft
    cons_terms = jnp.sum(diff * diff, axis=1, keepdims=True)         # (TB, 1)

    if mask_rows:
        row_idx = pl.program_id(0) * tb + jax.lax.broadcasted_iota(
            jnp.int32, (tb, 1), 0)
        valid_row = (row_idx < b_true).astype(jnp.float32)           # (TB, 1)
        hard_terms = hard_terms * valid_row
        soft_terms = soft_terms * valid_row
        cons_terms = cons_terms * valid_row

    hard_sum = jnp.sum(hard_terms)
    soft_sum = jnp.sum(soft_terms)
    cons_sum = jnp.sum(cons_terms)

    # pack the three partial sums into one lane-dense (8, 128) tile:
    #   sublane 0 -> hard_ce, 1 -> soft_ce, 2 -> consistency, rest zero.
    sub = jax.lax.broadcasted_iota(jnp.int32, (8, 128), 0)
    out_ref[...] = (jnp.where(sub == 0, hard_sum, 0.0)
                    + jnp.where(sub == 1, soft_sum, 0.0)
                    + jnp.where(sub == 2, cons_sum, 0.0))


# ----------------------------------------------------------------------------
# Wrapper: minimal padding, tiling, pallas_call, final reduction.
# ----------------------------------------------------------------------------
def ncod_loss_pallas(emb_n, centroids, logits, u_sel, targets, lam=1.0):
    b, d = emb_n.shape
    c = logits.shape[1]
    c_pad = _round_up(c, 128)

    # hoisted: centroid L2-normalization + transpose (once per step)
    cnorm = jnp.sqrt(jnp.sum(centroids * centroids, axis=1, keepdims=True))
    cent_t = (centroids / jnp.maximum(cnorm, NORM_EPS)).T            # (D, C)

    # -------------------- tile-size / VMEM model --------------------
    vmem_limit, budget = _vmem_budget()
    # per-batch-row bytes: double-buffered inputs + ~10 live (TB,C_pad) f32
    # temporaries (sims, s_exp, soft, l_shift, l_exp, probs, adj, log_adj,
    # onehot-select, diff) + a small (TB,D) term.
    bytes_per_row = (2 * 2 * d            # embeddings, bf16, 2 buffers
                     + 2 * 4 * c_pad      # logits, f32, 2 buffers
                     + 2 * 4 * 2          # u + targets, 2 buffers
                     + 10 * 4 * c_pad     # live f32 temporaries
                     + 4 * d)
    resident = 2 * (2 * d * c_pad) + 2 * 4 * 8 * 128   # centroids (2 bufs) + out
    tb_max = (budget - resident) // bytes_per_row
    tb_max = max(SUBLANE, (tb_max // SUBLANE) * SUBLANE)
    tb = int(min(tb_max, 1024, _round_up(b, SUBLANE)))
    b_pad = _round_up(b, tb)
    n_tiles = b_pad // tb

    mask_cols = (c != c_pad)
    mask_rows = (b_pad != b)

    # -------------------- inputs (pad only what is needed) --------------------
    emb_b = emb_n.astype(jnp.bfloat16)                               # (B, D)
    cent_b = cent_t.astype(jnp.bfloat16)                             # (D, C)
    if mask_cols:
        cent_b = jnp.concatenate(
            [cent_b, jnp.zeros((d, c_pad - c), jnp.bfloat16)], axis=1)
    logits_f = logits.astype(jnp.float32)                            # (B, C)
    if mask_cols:
        logits_f = jnp.concatenate(
            [logits_f, jnp.full((b, c_pad - c), NEG_INF, jnp.float32)], axis=1)
    u_f = u_sel.astype(jnp.float32).reshape(b, 1)
    tgt_i = targets.astype(jnp.int32).reshape(b, 1)

    if mask_rows:
        pad = b_pad - b
        emb_b = jnp.concatenate(
            [emb_b, jnp.zeros((pad, d), jnp.bfloat16)], axis=0)
        logits_f = jnp.concatenate(
            [logits_f, jnp.full((pad, c_pad), NEG_INF, jnp.float32)], axis=0)
        u_f = jnp.concatenate([u_f, jnp.zeros((pad, 1), jnp.float32)], axis=0)
        tgt_i = jnp.concatenate([tgt_i, jnp.zeros((pad, 1), jnp.int32)], axis=0)

    kernel = functools.partial(_ncod_loss_kernel, b, c, mask_rows, mask_cols)
    cost = pl.CostEstimate(
        flops=2 * b_pad * d * c_pad + 20 * b_pad * c_pad,
        transcendentals=3 * b_pad * c_pad + 3 * b_pad,
        bytes_accessed=(2 * b_pad * d            # embeddings (bf16)
                        + 4 * b_pad * c_pad      # logits (f32)
                        + 2 * d * c_pad          # centroids, counted once
                        + 8 * b_pad              # u + targets
                        + 4 * n_tiles * 8 * 128  # partial-sum tiles
                        ),
    )

    partials = pl.pallas_call(
        kernel,
        out_shape=jax.ShapeDtypeStruct((n_tiles, 8, 128), jnp.float32),
        grid_spec=pltpu.PrefetchScalarGridSpec(
            num_scalar_prefetch=0,
            grid=(n_tiles,),
            in_specs=[
                pl.BlockSpec((tb, d), lambda i: (i, 0)),       # embeddings bf16
                pl.BlockSpec((d, c_pad), lambda i: (0, 0)),    # centroids^T bf16
                pl.BlockSpec((tb, c_pad), lambda i: (i, 0)),   # logits f32
                pl.BlockSpec((tb, 1), lambda i: (i, 0)),       # u[indexes]
                pl.BlockSpec((tb, 1), lambda i: (i, 0)),       # targets
            ],
            out_specs=pl.BlockSpec((None, 8, 128), lambda i: (i, 0, 0)),
        ),
        compiler_params=pltpu.CompilerParams(
            dimension_semantics=("parallel",),
            vmem_limit_bytes=int(vmem_limit),
        ),
        cost_estimate=cost,
    )(emb_b, cent_b, logits_f, u_f, tgt_i)

    sums = jnp.sum(partials, axis=0)           # (8, 128)
    hard_sum, soft_sum, cons_sum = sums[0, 0], sums[1, 0], sums[2, 0]
    return (hard_sum + soft_sum) / b + lam * cons_sum / (b * c)


# ----------------------------------------------------------------------------
# Module state (deterministic init mirroring NCODLoss.__init__)
# ----------------------------------------------------------------------------
def init_ncod_state(labels, embedding_dimensions=32, total_epochs=150,
                    lambda_consistency=1.0, seed=0):
    labels = np.asarray(labels, dtype=np.int32)
    num_elements = int(labels.shape[0])
    num_classes = int(labels.max()) + 1
    bins = [np.nonzero(labels == c)[0].astype(np.int32)
            for c in range(num_classes)]
    max_len = max(1, max((len(bn) for bn in bins), default=1))
    padded_bins = np.full((num_classes, max_len), -1, dtype=np.int32)
    for c, idxs in enumerate(bins):
        padded_bins[c, :len(idxs)] = idxs
    bin_sizes = np.asarray([len(bn) for bn in bins], dtype=np.int32)

    key = jax.random.PRNGKey(seed)
    k_u, k_p, k_c = jax.random.split(key, 3)
    u = 1e-8 + 1e-9 * jax.random.normal(k_u, (num_elements, 1),
                                        dtype=jnp.float32)
    past = jax.random.uniform(k_p, (num_elements, embedding_dimensions),
                              dtype=jnp.float32)
    cent = jax.random.uniform(k_c, (num_classes, embedding_dimensions),
                              dtype=jnp.float32)
    return {
        "u": u,
        "past_embeddings": past,
        "centroids": cent,
        "padded_bins": jnp.asarray(padded_bins),
        "bin_sizes": jnp.asarray(bin_sizes),
        "total_epochs": total_epochs,
        "lambda_consistency": lambda_consistency,
        "num_classes": num_classes,
    }


# ----------------------------------------------------------------------------
# Vectorized centroid recomputation (replaces the per-class Python loop).
# percent == 100 reproduces the epoch-0 full-bin mean; otherwise it keeps the
# k smallest-u members of each bin (== torch.topk(..., largest=False)).
# TODO(synk): the ragged per-class top-k / gather stays in plain JAX; it has
# no clean rectangular Pallas tiling.
# ----------------------------------------------------------------------------
def _recompute_centroids(past, u, centroids, padded_bins, bin_sizes, percent):
    nc, max_len = padded_bins.shape
    sizes = bin_sizes.astype(jnp.int32)
    k = jnp.maximum(1, (sizes * percent) // 100)
    k = jnp.minimum(k, jnp.maximum(sizes, 1))

    safe_idx = jnp.where(padded_bins >= 0, padded_bins, 0)
    u_bins = jnp.where(padded_bins >= 0, u[safe_idx, 0], jnp.inf)    # (C, L)
    _, order = jax.lax.top_k(-u_bins, max_len)       # ascending-u; pads last
    sel = jnp.take_along_axis(safe_idx, order, axis=1)               # (C, L)
    keep = (jnp.arange(max_len)[None, :] < k[:, None]).astype(past.dtype)
    gathered = past[sel]                                             # (C, L, D)
    mean = (jnp.sum(gathered * keep[:, :, None], axis=1)
            / k[:, None].astype(past.dtype))
    return jnp.where((sizes > 0)[:, None], mean, centroids)


# ----------------------------------------------------------------------------
# Forward: buffer bookkeeping in plain JAX (glue), loss math in the kernel.
# ----------------------------------------------------------------------------
def ncod_loss_forward(state, *, logits, indexes, embeddings, targets, epoch):
    # embeddings = F.normalize(embeddings, dim=1)
    norms = jnp.sqrt(jnp.sum(embeddings * embeddings, axis=1, keepdims=True))
    emb_n = embeddings / jnp.maximum(norms, NORM_EPS)

    # past_embeddings[indexes] = embeddings
    past = state["past_embeddings"].at[indexes].set(emb_n)
    state["past_embeddings"] = past

    # TODO(synk): `percent` is a Python int derived from `epoch`, so a jitted
    # ncod_loss_forward retraces once per distinct epoch bucket.
    if epoch == 0:
        percent = 100
    else:
        percent = int(max(1, min(100, 50 + 50 * (1 - epoch /
                                                 state["total_epochs"]))))
    state["centroids"] = _recompute_centroids(
        past, state["u"], state["centroids"], state["padded_bins"],
        state["bin_sizes"], percent)

    u_sel = state["u"][indexes]                       # (B, 1)
    loss = ncod_loss_pallas(emb_n, state["centroids"], logits, u_sel, targets,
                            lam=state["lambda_consistency"])
    return loss, state


# ----------------------------------------------------------------------------
# Pure-JAX reference for the kernelized part (validation only).
# ----------------------------------------------------------------------------
def _reference_loss(emb_n, centroids, logits, u_sel, targets, lam):
    cnorm = jnp.sqrt(jnp.sum(centroids ** 2, axis=1, keepdims=True))
    cent_n = centroids / jnp.maximum(cnorm, NORM_EPS)
    soft = jax.nn.softmax(emb_n @ cent_n.T, axis=1)
    probs = jax.nn.softmax(logits, axis=1)
    log_probs = jax.nn.log_softmax(logits, axis=1)
    u_vals = jax.nn.sigmoid(u_sel[:, 0])
    adj = jnp.maximum(probs + u_vals[:, None] * soft, EPS)
    adj = adj / jnp.sum(adj, axis=1, keepdims=True)
    ce = -jnp.take_along_axis(log_probs, targets[:, None].astype(jnp.int32),
                              axis=1)[:, 0]
    hard_ce = jnp.mean((1.0 - u_vals) * ce)
    soft_ce = jnp.mean(-jnp.sum(soft * jnp.log(adj), axis=1))
    consistency = jnp.mean((adj - soft) ** 2)
    return hard_ce + soft_ce + lam * consistency


if __name__ == "__main__":
    # small synthetic "dataset": N=32 elements, C=4 classes, D=32 embed dims
    B, D, N, C = 8, 32, 32, 4
    labels = [i % C for i in range(N)]
    state = init_ncod_state(labels, embedding_dimensions=D, total_epochs=150,
                            lambda_consistency=1.0, seed=0)

    key = jax.random.PRNGKey(0)
    k1, k2 = jax.random.split(key, 2)
    logits = jax.random.normal(k1, (B, C), dtype=jnp.float32)
    embeddings = jax.random.normal(k2, (B, D), dtype=jnp.float32)
    indexes = (jnp.arange(B, dtype=jnp.int32) * 3) % N
    targets = jnp.asarray([labels[int(i)] for i in np.asarray(indexes)],
                          dtype=jnp.int32)

    # epoch 0 path (mean over full bins)
    loss0, state = ncod_loss_forward(state, logits=logits, indexes=indexes,
                                     embeddings=embeddings, targets=targets,
                                     epoch=0)
    # epoch > 0 path (top-k by u inside each bin)
    loss1, state = ncod_loss_forward(state, logits=logits, indexes=indexes,
                                     embeddings=embeddings, targets=targets,
                                     epoch=3)
    jax.block_until_ready((loss0, loss1))

    # validate the kernelized loss against a pure-JAX f32 reference.
    # Tolerance covers the bf16 similarity-matmul inputs (f32 accumulation);
    # row-sum reciprocals are now exact.
    norms = jnp.sqrt(jnp.sum(embeddings ** 2, axis=1, keepdims=True))
    emb_n = embeddings / jnp.maximum(norms, NORM_EPS)
    u_sel = state["u"][indexes]
    ref1 = _reference_loss(emb_n, state["centroids"], logits, u_sel, targets,
                           state["lambda_consistency"])
    np.testing.assert_allclose(np.asarray(loss1), np.asarray(ref1),
                               rtol=5e-3, atol=2e-3)

    print("KERNEL_OK")
</pallas_src>

<mosaic_0001>
module attributes {stable_mosaic.version = 11 : i64} {
  func.func @_ncod_loss_kernel(%arg0: i32, %arg1: memref<16x32xbf16, #tpu.memory_space<vmem>>, %arg2: memref<32x128xbf16, #tpu.memory_space<vmem>>, %arg3: memref<16x128xf32, #tpu.memory_space<vmem>>, %arg4: memref<16x1xf32, #tpu.memory_space<vmem>>, %arg5: memref<16x1xi32, #tpu.memory_space<vmem>>, %arg6: memref<1x8x128xf32, #tpu.memory_space<vmem>>) attributes {dimension_semantics = [#tpu.dimension_semantics<parallel>], iteration_bounds = array<i64: 1>, scalar_prefetch = 0 : i64, scratch_operands = 0 : i64, tpu.core_type = #tpu.core_type<tc>, window_params = [{transform_indices = @transform_0, window_bounds = array<i64: 16, 32>}, {pipeline_mode = #tpu.pipeline_mode<synchronous>, transform_indices = @transform_1, window_bounds = array<i64: 32, 128>}, {transform_indices = @transform_2, window_bounds = array<i64: 16, 128>}, {transform_indices = @transform_3, window_bounds = array<i64: 16, 1>}, {transform_indices = @transform_4, window_bounds = array<i64: 16, 1>}, {transform_indices = @transform_5, window_bounds = array<i64: 1, 8, 128>}]} {
    %0 = tpu.iota {dimensions = array<i32: 1>} : vector<1x128xi32>
    %c4_i32 = arith.constant 4 : i32
    %1 = vector.broadcast %c4_i32 : i32 to vector<1x128xi32>
    %2 = arith.cmpi slt, %0, %1 : vector<1x128xi32>
    %c0 = arith.constant 0 : index
    %c0_0 = arith.constant 0 : index
    %3 = vector.load %arg1[%c0, %c0_0] : memref<16x32xbf16, #tpu.memory_space<vmem>>, vector<16x32xbf16>
    %c0_1 = arith.constant 0 : index
    %c0_2 = arith.constant 0 : index
    %4 = vector.load %arg2[%c0_1, %c0_2] : memref<32x128xbf16, #tpu.memory_space<vmem>>, vector<32x128xbf16>
    %cst = arith.constant dense<0.000000e+00> : vector<16x128xf32>
    %5 = tpu.matmul %3, %4, %cst {dimension_numbers = #tpu.dot_dimension_numbers<[1], [0], [0], [1], [0, 0, 1, 1], [], []>} : vector<16x32xbf16>, vector<32x128xbf16>, vector<16x128xf32> -> vector<16x128xf32>
    %cst_3 = arith.constant -1.000000e+30 : f32
    %6 = vector.shape_cast %2 : vector<1x128xi1> to vector<1x128xi1>
    %7 = vector.broadcast %6 : vector<1x128xi1> to vector<16x128xi1>
    %8 = vector.broadcast %cst_3 : f32 to vector<16x128xf32>
    %9 = arith.select %7, %5, %8 : vector<16x128xi1>, vector<16x128xf32>
    %cst_4 = arith.constant dense<0xFF800000> : vector<16xf32>
    %10 = vector.multi_reduction <maximumf>, %9, %cst_4 [1] : vector<16x128xf32> to vector<16xf32>
    %11 = vector.shape_cast %10 : vector<16xf32> to vector<16x1xf32>
    %12 = vector.broadcast %11 : vector<16x1xf32> to vector<16x128xf32>
    %13 = arith.subf %9, %12 : vector<16x128xf32>
    %14 = math.exp %13 : vector<16x128xf32>
    %cst_5 = arith.constant dense<0.000000e+00> : vector<16xf32>
    %15 = vector.multi_reduction <add>, %14, %cst_5 [1] : vector<16x128xf32> to vector<16xf32>
    %16 = vector.shape_cast %15 : vector<16xf32> to vector<16x1xf32>
    %cst_6 = arith.constant 1.000000e+00 : f32
    %17 = vector.broadcast %cst_6 : f32 to vector<16x1xf32>
    %18 = arith.divf %17, %16 : vector<16x1xf32>
    %19 = vector.broadcast %18 : vector<16x1xf32> to vector<16x128xf32>
    %20 = arith.mulf %14, %19 : vector<16x128xf32>
    %c0_7 = arith.constant 0 : index
    %c0_8 = arith.constant 0 : index
    %21 = vector.load %arg3[%c0_7, %c0_8] : memref<16x128xf32, #tpu.memory_space<vmem>>, vector<16x128xf32>
    %cst_9 = arith.constant dense<0xFF800000> : vector<16xf32>
    %22 = vector.multi_reduction <maximumf>, %21, %cst_9 [1] : vector<16x128xf32> to vector<16xf32>
    %23 = vector.shape_cast %22 : vector<16xf32> to vector<16x1xf32>
    %24 = vector.broadcast %23 : vector<16x1xf32> to vector<16x128xf32>
    %25 = arith.subf %21, %24 : vector<16x128xf32>
    %26 = math.exp %25 : vector<16x128xf32>
    %cst_10 = arith.constant dense<0.000000e+00> : vector<16xf32>
    %27 = vector.multi_reduction <add>, %26, %cst_10 [1] : vector<16x128xf32> to vector<16xf32>
    %28 = vector.shape_cast %27 : vector<16xf32> to vector<16x1xf32>
    %cst_11 = arith.constant 1.000000e+00 : f32
    %29 = vector.broadcast %cst_11 : f32 to vector<16x1xf32>
    %30 = arith.divf %29, %28 : vector<16x1xf32>
    %31 = vector.broadcast %30 : vector<16x1xf32> to vector<16x128xf32>
    %32 = arith.mulf %26, %31 : vector<16x128xf32>
    %33 = math.log %28 : vector<16x1xf32>
    %c0_12 = arith.constant 0 : index
    %c0_13 = arith.constant 0 : index
    %34 = vector.load %arg4[%c0_12, %c0_13] : memref<16x1xf32, #tpu.memory_space<vmem>>, vector<16x1xf32>
    %35 = arith.negf %34 : vector<16x1xf32>
    %36 = math.exp %35 : vector<16x1xf32>
    %cst_14 = arith.constant 1.000000e+00 : f32
    %37 = vector.broadcast %cst_14 : f32 to vector<16x1xf32>
    %38 = arith.addf %37, %36 : vector<16x1xf32>
    %39 = arith.divf %37, %38 : vector<16x1xf32>
    %40 = vector.broadcast %39 : vector<16x1xf32> to vector<16x128xf32>
    %41 = arith.mulf %40, %20 : vector<16x128xf32>
    %42 = arith.addf %32, %41 : vector<16x128xf32>
    %cst_15 = arith.constant 9.99999997E-7 : f32
    %43 = vector.broadcast %cst_15 : f32 to vector<16x128xf32>
    %44 = arith.maximumf %42, %43 : vector<16x128xf32>
    %cst_16 = arith.constant 0.000000e+00 : f32
    %45 = vector.shape_cast %2 : vector<1x128xi1> to vector<1x128xi1>
    %46 = vector.broadcast %45 : vector<1x128xi1> to vector<16x128xi1>
    %47 = vector.broadcast %cst_16 : f32 to vector<16x128xf32>
    %48 = arith.select %46, %44, %47 : vector<16x128xi1>, vector<16x128xf32>
    %cst_17 = arith.constant dense<0.000000e+00> : vector<16xf32>
    %49 = vector.multi_reduction <add>, %48, %cst_17 [1] : vector<16x128xf32> to vector<16xf32>
    %50 = vector.shape_cast %49 : vector<16xf32> to vector<16x1xf32>
    %cst_18 = arith.constant 1.000000e+00 : f32
    %51 = vector.broadcast %cst_18 : f32 to vector<16x1xf32>
    %52 = arith.divf %51, %50 : vector<16x1xf32>
    %53 = vector.broadcast %52 : vector<16x1xf32> to vector<16x128xf32>
    %54 = arith.mulf %48, %53 : vector<16x128xf32>
    %cst_19 = arith.constant 1.000000e+00 : f32
    %55 = vector.shape_cast %2 : vector<1x128xi1> to vector<1x128xi1>
    %56 = vector.broadcast %55 : vector<1x128xi1> to vector<16x128xi1>
    %57 = vector.broadcast %cst_19 : f32 to vector<16x128xf32>
    %58 = arith.select %56, %54, %57 : vector<16x128xi1>, vector<16x128xf32>
    %59 = math.log %58 : vector<16x128xf32>
    %c0_20 = arith.constant 0 : index
    %c0_21 = arith.constant 0 : index
    %60 = vector.load %arg5[%c0_20, %c0_21] : memref<16x1xi32, #tpu.memory_space<vmem>>, vector<16x1xi32>
    %61 = vector.broadcast %0 : vector<1x128xi32> to vector<16x128xi32>
    %62 = vector.broadcast %60 : vector<16x1xi32> to vector<16x128xi32>
    %63 = arith.cmpi eq, %61, %62 : vector<16x128xi32>
    %cst_22 = arith.constant 0.000000e+00 : f32
    %64 = vector.broadcast %cst_22 : f32 to vector<16x128xf32>
    %65 = arith.select %63, %25, %64 : vector<16x128xi1>, vector<16x128xf32>
    %cst_23 = arith.constant dense<0.000000e+00> : vector<16xf32>
    %66 = vector.multi_reduction <add>, %65, %cst_23 [1] : vector<16x128xf32> to vector<16xf32>
    %67 = vector.shape_cast %66 : vector<16xf32> to vector<16x1xf32>
    %68 = arith.subf %33, %67 : vector<16x1xf32>
    %cst_24 = arith.constant 1.000000e+00 : f32
    %69 = vector.broadcast %cst_24 : f32 to vector<16x1xf32>
    %70 = arith.subf %69, %39 : vector<16x1xf32>
    %71 = arith.mulf %70, %68 : vector<16x1xf32>
    %cst_25 = arith.constant 0.000000e+00 : f32
    %72 = vector.broadcast %cst_25 : f32 to vector<16x128xf32>
    %73 = arith.subf %72, %20 : vector<16x128xf32>
    %74 = arith.mulf %73, %59 : vector<16x128xf32>
    %cst_26 = arith.constant dense<0.000000e+00> : vector<16xf32>
    %75 = vector.multi_reduction <add>, %74, %cst_26 [1] : vector<16x128xf32> to vector<16xf32>
    %76 = vector.shape_cast %75 : vector<16xf32> to vector<16x1xf32>
    %77 = arith.subf %54, %20 : vector<16x128xf32>
    %78 = arith.mulf %77, %77 : vector<16x128xf32>
    %cst_27 = arith.constant dense<0.000000e+00> : vector<16xf32>
    %79 = vector.multi_reduction <add>, %78, %cst_27 [1] : vector<16x128xf32> to vector<16xf32>
    %80 = vector.shape_cast %79 : vector<16xf32> to vector<16x1xf32>
    %c16_i32 = arith.constant 16 : i32
    %81 = arith.muli %arg0, %c16_i32 : i32
    %82 = tpu.iota {dimensions = array<i32: 0>} : vector<16x1xi32>
    %83 = vector.broadcast %81 : i32 to vector<16x1xi32>
    %84 = arith.addi %83, %82 : vector<16x1xi32>
    %c8_i32 = arith.constant 8 : i32
    %85 = vector.broadcast %c8_i32 : i32 to vector<16x1xi32>
    %86 = arith.cmpi slt, %84, %85 : vector<16x1xi32>
    %87 = arith.extui %86 : vector<16x1xi1> to vector<16x1xi32>
    %88 = arith.sitofp %87 : vector<16x1xi32> to vector<16x1xf32>
    %89 = arith.mulf %71, %88 : vector<16x1xf32>
    %90 = arith.mulf %76, %88 : vector<16x1xf32>
    %91 = arith.mulf %80, %88 : vector<16x1xf32>
    %92 = vector.shape_cast %89 : vector<16x1xf32> to vector<1x16x1xf32>
    %cst_28 = arith.constant dense<0.000000e+00> : vector<1xf32>
    %93 = vector.multi_reduction <add>, %92, %cst_28 [1, 2] : vector<1x16x1xf32> to vector<1xf32>
    %94 = vector.shape_cast %93 : vector<1xf32> to vector<1x1x1xf32>
    %95 = vector.extract %94[0, 0, 0] : f32 from vector<1x1x1xf32>
    %96 = vector.shape_cast %90 : vector<16x1xf32> to vector<1x16x1xf32>
    %cst_29 = arith.constant dense<0.000000e+00> : vector<1xf32>
    %97 = vector.multi_reduction <add>, %96, %cst_29 [1, 2] : vector<1x16x1xf32> to vector<1xf32>
    %98 = vector.shape_cast %97 : vector<1xf32> to vector<1x1x1xf32>
    %99 = vector.extract %98[0, 0, 0] : f32 from vector<1x1x1xf32>
    %100 = vector.shape_cast %91 : vector<16x1xf32> to vector<1x16x1xf32>
    %cst_30 = arith.constant dense<0.000000e+00> : vector<1xf32>
    %101 = vector.multi_reduction <add>, %100, %cst_30 [1, 2] : vector<1x16x1xf32> to vector<1xf32>
    %102 = vector.shape_cast %101 : vector<1xf32> to vector<1x1x1xf32>
    %103 = vector.extract %102[0, 0, 0] : f32 from vector<1x1x1xf32>
    %104 = tpu.iota {dimensions = array<i32: 0>} : vector<8x128xi32>
    %c0_i32 = arith.constant 0 : i32
    %105 = vector.broadcast %c0_i32 : i32 to vector<8x128xi32>
    %106 = arith.cmpi eq, %104, %105 : vector<8x128xi32>
    %cst_31 = arith.constant 0.000000e+00 : f32
    %107 = vector.broadcast %95 : f32 to vector<8x128xf32>
    %108 = vector.broadcast %cst_31 : f32 to vector<8x128xf32>
    %109 = arith.select %106, %107, %108 : vector<8x128xi1>, vector<8x128xf32>
    %c1_i32 = arith.constant 1 : i32
    %110 = vector.broadcast %c1_i32 : i32 to vector<8x128xi32>
    %111 = arith.cmpi eq, %104, %110 : vector<8x128xi32>
    %cst_32 = arith.constant 0.000000e+00 : f32
    %112 = vector.broadcast %99 : f32 to vector<8x128xf32>
    %113 = vector.broadcast %cst_32 : f32 to vector<8x128xf32>
    %114 = arith.select %111, %112, %113 : vector<8x128xi1>, vector<8x128xf32>
    %115 = arith.addf %109, %114 : vector<8x128xf32>
    %c2_i32 = arith.constant 2 : i32
    %116 = vector.broadcast %c2_i32 : i32 to vector<8x128xi32>
    %117 = arith.cmpi eq, %104, %116 : vector<8x128xi32>
    %cst_33 = arith.constant 0.000000e+00 : f32
    %118 = vector.broadcast %103 : f32 to vector<8x128xf32>
    %119 = vector.broadcast %cst_33 : f32 to vector<8x128xf32>
    %120 = arith.select %117, %118, %119 : vector<8x128xi1>, vector<8x128xf32>
    %121 = arith.addf %115, %120 : vector<8x128xf32>
    %c0_34 = arith.constant 0 : index
    %c0_35 = arith.constant 0 : index
    %c0_36 = arith.constant 0 : index
    %122 = vector.load %arg6[%c0_34, %c0_35, %c0_36] : memref<1x8x128xf32, #tpu.memory_space<vmem>>, vector<1x8x128xf32>
    %123 = vector.shape_cast %122 : vector<1x8x128xf32> to vector<8x128xf32>
    %124 = vector.shape_cast %121 : vector<8x128xf32> to vector<1x8x128xf32>
    tpu.vector_store %arg6[%c0_34, %c0_35, %c0_36], %124 {strides = array<i32>} : memref<1x8x128xf32, #tpu.memory_space<vmem>>, vector<1x8x128xf32>,
    return
  }
  func.func @transform_0(%arg0: i32) -> (i32, i32) {
    %c0_i32 = arith.constant 0 : i32
    %c0_i32_0 = arith.constant 0 : i32
    return %arg0, %c0_i32 : i32, i32
  }
  func.func @transform_1(%arg0: i32) -> (i32, i32) {
    %c0_i32 = arith.constant 0 : i32
    %c0_i32_0 = arith.constant 0 : i32
    %c0_i32_1 = arith.constant 0 : i32
    return %c0_i32, %c0_i32_0 : i32, i32
  }
  func.func @transform_2(%arg0: i32) -> (i32, i32) {
    %c0_i32 = arith.constant 0 : i32
    %c0_i32_0 = arith.constant 0 : i32
    return %arg0, %c0_i32 : i32, i32
  }
  func.func @transform_3(%arg0: i32) -> (i32, i32) {
    %c0_i32 = arith.constant 0 : i32
    %c0_i32_0 = arith.constant 0 : i32
    return %arg0, %c0_i32 : i32, i32
  }
  func.func @transform_4(%arg0: i32) -> (i32, i32) {
    %c0_i32 = arith.constant 0 : i32
    %c0_i32_0 = arith.constant 0 : i32
    return %arg0, %c0_i32 : i32, i32
  }
  func.func @transform_5(%arg0: i32) -> (i32, i32, i32) {
    %c0_i32 = arith.constant 0 : i32
    %c0_i32_0 = arith.constant 0 : i32
    %c0_i32_1 = arith.constant 0 : i32
    return %arg0, %c0_i32, %c0_i32_0 : i32, i32, i32
  }
}

</mosaic_0001>

<bundles_post_ra>
// kernel: tpu_custom_call.1
= control target key start
LH: loop header
LB: loop body
LE: loop exit
PB: predicated region body
PF: predicated region fallthrough
CT: control target
= control target key end

     0   :  { %10 = vsyncpa [#allocation3], 0  ;;  %s583_s0 = inlined_call_operand.hbm [shape: bf16[16,32], index: 0, kind: input, shape index: {}]   ;;  %s584_s1 = inlined_call_operand.vmem [shape: bf16[32,128], index: 1, kind: input, shape index: {}]   ;;  %s585_s2 = inlined_call_operand.vmem [shape: f32[16,128], index: 2, kind: input, shape index: {}]   ;;  %s586_s3 = inlined_call_operand.vmem [shape: f32[16,1], index: 3, kind: input, shape index: {}]   ;;  %s587_s4 = inlined_call_operand.vmem [shape: s32[16,1], index: 4, kind: input, shape index: {}]   ;;  %s588_s5 = inlined_call_operand.hbm [shape: f32[1,8,128], index: 5, kind: output, shape index: {}]  }
   0x1   :  { %11 = vsyncpa [#allocation4], 0  ;;  %s445_s18 = smov [#allocation2]   ;;  %s397_s22 = scalar_lea.hbm %s583_s0, 128 }
   0x2   :  { %s17_s19 = sshll.u32 %s445_s18, 4  ;;  %p398_p0 = scmp.ne.s32.totalorder %s583_s0, %s397_s22  ;;  %s18_s19 = int_to_ptr.vmem [resolvable:$true] %s17_s19 }
   0x3   :  { %p401_p1 = scmp.lt.u32.totalorder %s397_s22, %s583_s0 }
   0x5   :  { %p403_p2 = pnand %p401_p1, %p398_p0 }
   0x7   :  { %406 = shalt.err (!%p403_p2)
}
   0x8   :  { %s407_s27 = scalar_lea.vmem %s18_s19, 128  ;;  %p412_p4 = scmp.lt.s32.totalorder %s18_s19, %s18_s19 }
   0x9   :  { %p408_p3 = scmp.ne.s32.totalorder %s18_s19, %s407_s27  ;;  %p413_p5 = scmp.lt.s32.totalorder %s407_s27, %s407_s27 }
   0xb   :  { %p414_p6 = por %p413_p5, %p412_p4 }
   0xd   :  { %p415_p7 = pnand %p414_p6, %p408_p3 }
   0xf   :  { %418 = shalt.err (!%p415_p7)
}
  0x10   :  { %s446_s28 = smov 64   ;;  %s447_s29 = smov 4  }
  0x11   :  { %23 = dma.hbm_to_vmem [thread:$0]  %s583_s0, 128, %s18_s19, [#allocation3], %s446_s28, %s446_s28, %s447_s29  }
  0x12   :  { %441 = dma.done.wait [#allocation3], 128  }
  0x13   :  { %442 = vsyncadd [#allocation3], 4294967168  ;;  %v448_v0 = vmov 0.0   ;;  %vm449_vm0 = vmmov 0   ;;  %v358_v1 = vld [vmem:[%s584_s1] sm:$0xff]   ;;  %v359_v2 = vld [vmem:[%s584_s1 + $0x8] sm:$0xff]   ;;  %v36_v12 = vlaneseq }
  0x14   :  { %335 = vmatprep.subr.bf16.mxu0 %v448_v0  ;;  %339 = vmatprep.mubr.msk.bf16.mxu0 %vm449_vm0, %v448_v0  ;;  %v132_v3 = vld [vmem:[%s585_s2 + $0x8] sm:$0xff]  ;;  %v360_v4 = vld [vmem:[#allocation2] sm:$0xff]   ;;  %vm62_vm1 = vcmask 261120   ;;  %v450_v22 = vmov 0   ;;  %vm262_vm5 = vcmask 7168   ;;  %s451_s21 = smov [#allocation5]  }
  0x15   :  { %336 = vmatpush3.bf16.msra.mxu0 %v358_v1  ;;  %135 = vmax.xlane.f32.xlu1 %v132_v3  ;;  %v131_v5 = vld [vmem:[%s585_s2] sm:$0xff]  ;;  %v516_v14 = vand.u32 127, %v36_v12  ;;  %v158_v26 = vld [vmem:[%s586_s3 + $0x8] sm:$0xff]  ;;  %s317_s22 = sshll.u32 %s451_s21, 4  ;;  %s318_s22 = int_to_ptr.vmem [resolvable:$true] %s317_s22 }
  0x16   :  { %337 = vmatprep.subr.bf16.mxu0 %v448_v0  ;;  %357 = vset.pattern.permute.xlu1 %v450_v22  ;;  %v157_v24 = vld [vmem:[%s586_s3] sm:$0xff]  ;;  %v331_v30 = vmul.f32 -1.442695, %v158_v26  ;;  %v206_v41 = vld [vmem:[%s587_s4 + $0x8] sm:$0xff]  ;;  %s419_s23 = scalar_lea.vmem %s318_s22, 128  ;;  %p424_p9 = scmp.lt.s32.totalorder %s318_s22, %s318_s22 }
  0x17   :  { %vm38_vm2 = vcmp.lt.s32.totalorder %v516_v14, 4  ;;  %356 = vset.pattern.permute.xlu0 %v450_v22  ;;  %v330_v28 = vmul.f32 -1.442695, %v157_v24  ;;  %v205_v0 = vld [vmem:[%s587_s4] sm:$0xff]  ;;  %p420_p8 = scmp.ne.s32.totalorder %s318_s22, %s419_s23  ;;  %p425_p10 = scmp.lt.s32.totalorder %s419_s23, %s419_s23 }
  0x19   :  { %338 = vmatpush3.bf16.msra.mxu0 %v359_v2  ;;  %133 = vmax.xlane.f32.xlu1 %v131_v5  ;;  %p426_p11 = por %p425_p10, %p424_p9 }
  0x1b   :  { %p427_p12 = pnand %p426_p11, %p420_p8 }
  0x1c   :  { %340 = vmatmul.mubr.msk.bf16.vlgmr.msra.gmra.mrb[0].mxu0 %vm62_vm1, %v360_v4 }
  0xa2   :  { %v136_v6 = vpop.xlane.xlu1 %135 }
  0xa3   :  { %v512_v11 = vsub.f32 %v132_v3, %v136_v6 }
  0xa5   :  { %v141_v13 = vmul.f32 1.442695, %v512_v11 }
  0xa6   :  { %v134_v7 = vpop.xlane.xlu1 %133 }
  0xa7   :  { %v506_v8 = vsub.f32 %v131_v5, %v134_v7 }
  0xa9   :  { %v139_v9 = vmul.f32 1.442695, %v506_v8 }
  0xab   :  { %361 = vpow2.f32 %v139_v9 }
  0xac   :  { %363 = vpow2.f32 %v141_v13 }
  0xb5   :  { %v509_v10 = vpop.eup %361 }
  0xb6   :  { %143 = vadd.xlane.f32.xlu1 %v509_v10  ;;  %v364_v21 = vpop.eup %363 }
  0xef   :  { %v100_v15 = vpop.f32.mrb[0].mxu0 }
  0xf0   :  { %v341_v16 = vpop.f32.mrb[1].mxu0  ;;  %v109_v20 = vsel %vm38_vm2, %v100_v15, -1e+30 }
  0xf1   :  { %v103_v17 = vpop.f32.mrb[2].mxu0 }
  0xf2   :  { %v342_v18 = vpop.f32.mrb[3].mxu0  ;;  %v110_v19 = vsel %vm38_vm2, %v103_v17, -1e+30 }
  0xf3   :  { %113 = vmax.xlane.f32.xlu0 %v110_v19 }
  0xf7   :  { %111 = vmax.xlane.f32.xlu0 %v109_v20 }
  0xfb   :  { %145 = vadd.xlane.f32.xlu0 %v364_v21 }
 0x143   :  { %v540_v43 = vpop.xlane.xlu1 %143 }
 0x180   :  { %v114_v23 = vpop.xlane.xlu0 %113 }
 0x181   :  { %v116_v25 = vsub.f32 %v110_v19, %v114_v23 }
 0x183   :  { %v119_v27 = vmul.f32 1.442695, %v116_v25 }
 0x184   :  { %v112_v29 = vpop.xlane.xlu0 %111 }
 0x185   :  { %365 = vpow2.f32 %v119_v27  ;;  %v115_v31 = vsub.f32 %v109_v20, %v112_v29 }
 0x186   :  { %367 = vpow2.f32 %v330_v28 }
 0x187   :  { %v117_v32 = vmul.f32 1.442695, %v115_v31  ;;  %369 = vpow2.f32 %v331_v30 }
 0x188   :  { %v538_v42 = vpop.xlane.xlu0 %145 }
 0x189   :  { %371 = vpow2.f32 %v117_v32 }
 0x18f   :  { %v366_v33 = vpop.eup %365 }
 0x190   :  { %123 = vadd.xlane.f32.xlu0 %v366_v33  ;;  %v368_v34 = vpop.eup %367 }
 0x191   :  { %v370_v35 = vpop.eup %369  ;;  %v165_v37 = vadd.f32 1.0, %v368_v34 }
 0x192   :  { %v166_v38 = vadd.f32 1.0, %v370_v35 }
 0x193   :  { %v372_v36 = vpop.eup %371  ;;  %373 = vrcp.f32 %v165_v37 }
 0x194   :  { %121 = vadd.xlane.f32.xlu1 %v372_v36  ;;  %375 = vrcp.f32 %v166_v38 }
 0x195   :  { %377 = vrcp.f32 %v538_v42 }
 0x19d   :  { %v529_v39 = vpop.eup %373 }
 0x19e   :  { %v531_v40 = vpop.eup %375  ;;  %v223_v34 = vsub.f32 1.0, %v529_v39 }
 0x19f   :  { %v378_v46 = vpop.eup %377  ;;  %v224_v29 = vsub.f32 1.0, %v531_v40 }
 0x1a0   :  { %v152_v51 = vmul.f32 %v378_v46, %v364_v21 }
 0x1a5   :  { %173 = vperm.xlu1 %357, %v529_v39  }
 0x1a6   :  { %178 = vperm.xlu0 %356, %v531_v40  }
 0x1a9   :  { %211 = vperm.xlu1 %357, %v206_v41  }
 0x21d   :  { %v124_v44 = vpop.xlane.xlu0 %123 }
 0x21e   :  { %379 = vrcp.f32 %v124_v44 }
 0x21f   :  { %381 = vrcp.f32 %v540_v43 }
 0x221   :  { %v122_v45 = vpop.xlane.xlu1 %121 }
 0x222   :  { %383 = vrcp.f32 %v122_v45 }
 0x225   :  { %v179_v48 = vpop.permute.xlu0 %178  ;;  %v174_v56 = vpop.permute.xlu1 %173 }
 0x228   :  { %v380_v47 = vpop.eup %379 }
 0x229   :  { %v130_v49 = vmul.f32 %v380_v47, %v366_v33  ;;  %v382_v50 = vpop.eup %381  ;;  %v212_v1 = vpop.permute.xlu1 %211 }
 0x22a   :  { %v151_v57 = vmul.f32 %v382_v50, %v509_v10  ;;  %vm214_vm3 = vcmp.eq.s32.totalorder %v516_v14, %v212_v1 }
 0x22b   :  { %v182_v52 = vmul.f32 %v179_v48, %v130_v49  ;;  %v216_v2 = vsel %vm214_vm3, %v512_v11, 0.0  ;;  %v228_v23 = vsub.f32 0.0, %v130_v49 }
 0x22c   :  { %v384_v53 = vpop.eup %383 }
 0x22d   :  { %v129_v54 = vmul.f32 %v384_v53, %v372_v36  ;;  %v184_v55 = vadd.f32 %v182_v52, %v152_v51 }
 0x22f   :  { %v181_v58 = vmul.f32 %v174_v56, %v129_v54  ;;  %v186_v59 = vmax.f32 %v184_v55, 1e-06 }
 0x231   :  { %v183_v60 = vadd.f32 %v181_v58, %v151_v57  ;;  %v188_v61 = vsel %vm38_vm2, %v186_v59, 0.0 }
 0x232   :  { %191 = vadd.xlane.f32.xlu1 %v188_v61 }
 0x233   :  { %v185_v62 = vmax.f32 %v183_v60, 1e-06 }
 0x235   :  { %v187_v63 = vsel %vm38_vm2, %v185_v62, 0.0 }
 0x236   :  { %189 = vadd.xlane.f32.xlu0 %v187_v63 }
 0x243   :  { %208 = vperm.xlu1 %357, %v205_v0  }
 0x267   :  { %219 = vadd.xlane.f32.xlu1 %v216_v2 }
 0x2bf   :  { %v192_v3 = vpop.xlane.xlu1 %191 }
 0x2c0   :  { %385 = vrcp.f32 %v192_v3 }
 0x2c3   :  { %v209_v4 = vpop.permute.xlu1 %208  ;;  %v190_v5 = vpop.xlane.xlu0 %189 }
 0x2c4   :  { %vm213_vm4 = vcmp.eq.s32.totalorder %v516_v14, %v209_v4  ;;  %387 = vrcp.f32 %v190_v5 }
 0x2c5   :  { %v215_v6 = vsel %vm213_vm4, %v506_v8, 0.0  ;;  %v227_v8 = vsub.f32 0.0, %v129_v54 }
 0x2c6   :  { %217 = vadd.xlane.f32.xlu0 %v215_v6 }
 0x2ca   :  { %v386_v7 = vpop.eup %385 }
 0x2cb   :  { %v198_v9 = vmul.f32 %v386_v7, %v188_v61 }
 0x2cd   :  { %v236_v10 = vsub.f32 %v198_v9, %v130_v49  ;;  %v200_v15 = vsel %vm38_vm2, %v198_v9, 1.0 }
 0x2ce   :  { %v388_v13 = vpop.eup %387  ;;  %389 = vlog2.f32 %v200_v15  ;;  %v245_v15 = vshrl.u32 %v36_v12, 7 }
 0x2cf   :  { %v238_v16 = vmul.f32 %v236_v10, %v236_v10  ;;  %v197_v11 = vmul.f32 %v388_v13, %v187_v63 }
 0x2d0   :  { %vm302_vm6 = vcmp.eq.s32.totalorder %v245_v15, 1  ;;  %vm299_vm7 = vcmp.eq.s32.totalorder %v245_v15, 0  ;;  %vm306_vm8 = vcmp.eq.s32.totalorder %v245_v15, 2 }
 0x2d1   :  { %241 = vadd.xlane.f32.xlu0 %v238_v16  ;;  %v199_v17 = vsel %vm38_vm2, %v197_v11, 1.0  ;;  %v235_v25 = vsub.f32 %v197_v11, %v129_v54 }
 0x2d2   :  { %391 = vlog2.f32 %v199_v17 }
 0x2d3   :  { %v237_v26 = vmul.f32 %v235_v25, %v235_v25  ;;  %393 = vlog2.f32 %v538_v42 }
 0x2d4   :  { %395 = vlog2.f32 %v540_v43 }
 0x2d8   :  { %v390_v18 = vpop.eup %389 }
 0x2d9   :  { %v204_v22 = vmul.f32 0.6931472, %v390_v18 }
 0x2db   :  { %v230_v24 = vmul.f32 %v228_v23, %v204_v22 }
 0x2dc   :  { %v392_v19 = vpop.eup %391 }
 0x2dd   :  { %v202_v20 = vmul.f32 0.6931472, %v392_v19  ;;  %v394_v14 = vpop.eup %393 }
 0x2de   :  { %v156_v28 = vmul.f32 0.6931472, %v394_v14  ;;  %v396_v31 = vpop.eup %395 }
 0x2df   :  { %v229_v21 = vmul.f32 %v227_v8, %v202_v20  ;;  %v154_v33 = vmul.f32 0.6931472, %v396_v31 }
 0x2e1   :  { %231 = vadd.xlane.f32.xlu0 %v229_v21 }
 0x2e5   :  { %233 = vadd.xlane.f32.xlu0 %v230_v24 }
 0x2e9   :  { %239 = vadd.xlane.f32.xlu0 %v237_v26 }
 0x2f4   :  { %v220_v27 = vpop.xlane.xlu1 %219 }
 0x2f5   :  { %v222_v30 = vsub.f32 %v156_v28, %v220_v27 }
 0x2f7   :  { %v226_v32 = vmul.f32 %v224_v29, %v222_v30 }
 0x2f9   :  { %v257_v36 = vmul.f32 0.0, %v226_v32 }
 0x2fb   :  { %v264_v42 = vsel %vm262_vm5, %v257_v36, 0.0 }
 0x353   :  { %v218_v35 = vpop.xlane.xlu0 %217 }
 0x354   :  { %v221_v37 = vsub.f32 %v154_v33, %v218_v35 }
 0x356   :  { %v225_v38 = vmul.f32 %v223_v34, %v221_v37 }
 0x358   :  { %v263_v41 = vsel %vm262_vm5, %v225_v38, 0.0 }
 0x359   :  { %v265_v43 = vadd.f32 %v264_v42, %v263_v41 }
 0x35b   :  { %266 = vadd.xlane.f32.xlu0 %v265_v43 }
 0x35e   :  { %v242_v44 = vpop.xlane.xlu0 %241 }
 0x35f   :  { %v261_v47 = vmul.f32 0.0, %v242_v44 }
 0x361   :  { %v288_v52 = vsel %vm262_vm5, %v261_v47, 0.0 }
 0x36e   :  { %v232_v45 = vpop.xlane.xlu0 %231 }
 0x36f   :  { %v275_v48 = vsel %vm262_vm5, %v232_v45, 0.0 }
 0x372   :  { %v234_v40 = vpop.xlane.xlu0 %233 }
 0x373   :  { %v259_v46 = vmul.f32 0.0, %v234_v40 }
 0x375   :  { %v276_v39 = vsel %vm262_vm5, %v259_v46, 0.0 }
 0x376   :  { %v240_v49 = vpop.xlane.xlu0 %239  ;;  %v277_v50 = vadd.f32 %v276_v39, %v275_v48 }
 0x377   :  { %v287_v51 = vsel %vm262_vm5, %v240_v49, 0.0 }
 0x378   :  { %278 = vadd.xlane.f32.xlu0 %v277_v50  ;;  %v289_v53 = vadd.f32 %v288_v52, %v287_v51 }
 0x37c   :  { %290 = vadd.xlane.f32.xlu0 %v289_v53 }
 0x3e8   :  { %v267_v54 = vpop.xlane.xlu0 %266 }
 0x3e9   :  { %v268_v55 = vrot.slane %v267_v54, 4 }
 0x3eb   :  { %v269_v56 = vadd.f32 %v268_v55, %v267_v54 }
 0x3ed   :  { %v270_v57 = vrot.slane %v269_v56, 2 }
 0x3ef   :  { %v271_v58 = vadd.f32 %v270_v57, %v269_v56 }
 0x3f1   :  { %v272_v59 = vrot.slane %v271_v58, 1 }
 0x3f3   :  { %v273_v60 = vadd.f32 %v272_v59, %v271_v58 }
 0x3f5   :  { %343 = vpush %v273_v60 }
 0x405   :  { %v279_v61 = vpop.xlane.xlu0 %278 }
 0x406   :  { %v280_v62 = vrot.slane %v279_v61, 4 }
 0x408   :  { %v281_v63 = vadd.f32 %v280_v62, %v279_v61 }
 0x409   :  { %v291_v0 = vpop.xlane.xlu0 %290 }
 0x40a   :  { %v282_v1 = vrot.slane %v281_v63, 2  ;;  %v292_v2 = vrot.slane %v291_v0, 4 }
 0x40c   :  { %v293_v3 = vadd.f32 %v292_v2, %v291_v0  ;;  %v283_v4 = vadd.f32 %v282_v1, %v281_v63 }
 0x40e   :  { %v294_v5 = vrot.slane %v293_v3, 2  ;;  %v284_v6 = vrot.slane %v283_v4, 1 }
 0x410   :  { %v295_v7 = vadd.f32 %v294_v5, %v293_v3  ;;  %v285_v9 = vadd.f32 %v284_v6, %v283_v4 }
 0x412   :  { %345 = vpush %v285_v9  ;;  %v296_v10 = vrot.slane %v295_v7, 1 }
 0x414   :  { %v297_v13 = vadd.f32 %v296_v10, %v295_v7 }
 0x416   :  { %347 = vpush %v297_v13 }
 0x426   :  { %s344_s4 = spop %343 }
 0x427   :  { %v300_v16 = vstv %s344_s4 }
 0x428   :  { %v301_v18 = vsel %vm299_vm7, %v300_v16, 0.0 }
 0x443   :  { %s346_s19 = spop %345 }
 0x444   :  { %v303_v11 = vstv %s346_s19 }
 0x445   :  { %v304_v17 = vsel %vm302_vm6, %v303_v11, 0.0 }
 0x446   :  { %v305_v19 = vadd.f32 %v304_v17, %v301_v18 }
 0x447   :  { %s348_s20 = spop %347 }
 0x448   :  { %v307_v20 = vstv %s348_s20 }
 0x449   :  { %v308_v8 = vsel %vm306_vm8, %v307_v20, 0.0 }
 0x44a   :  { %v309_v21 = vadd.f32 %v308_v8, %v305_v19 }
 0x44c   :  { %310 = vst [vmem:[#allocation5] sm:$0xff] %v309_v21 }
 0x44d   :  { %430 = shalt.err (!%p427_p12)
}
 0x44e   :  { %s431_s26 = scalar_lea.hbm %s588_s5, 128 }
 0x44f   :  { %p432_p13 = scmp.ne.s32.totalorder %s588_s5, %s431_s26  ;;  %p435_p0 = scmp.lt.u32.totalorder %s431_s26, %s588_s5 }
 0x451   :  { %p437_p1 = pnand %p435_p0, %p432_p13 }
 0x453   :  { %440 = shalt.err (!%p437_p1)
}
 0x454   :  { %320 = dma.vmem_to_hbm [thread:$0]  %s318_s22, 128, %s588_s5, [#allocation4]  }
 0x455   :  { %443 = dma.done.wait [#allocation4], 128  }
 0x456   :  { %444 = vsyncadd [#allocation4], 4294967168 }
 0x457   :  { %324 = vsyncpa [#allocation3], 1 }
 0x458   :  { %325 = vsyncpa [#allocation4], 1 }

</bundles_post_ra>
